<compile_context>
chip_gen: v6e
topology: v6e:2x2x1
jax: 0.10.0
libtpu: 0.0.40
codegen_flags: <defaults>
</compile_context>

<pallas_src>
import functools

import jax
import jax.numpy as jnp
from jax.experimental import pallas as pl
from jax.experimental.pallas import tpu as pltpu

_HIDDEN = 24          # hidden width of every layer in the PyTorch module
_OUT_LANES = 128      # lane-dense output slab width
_MAX_TB = 2048        # batch tile for the large-B grid path (mult. of 256)


def _k_pad(state_size):
    # rows for [x | 1] / fused layer-1 weight block, sublane (8) aligned
    return ((state_size + 1 + 7) // 8) * 8


def a2c_kernel(x_ref, w_ref, out_ref, *, k_pad, hidden, action_size):
    H, A = hidden, action_size
    L2 = k_pad                 # start row of fused layer-2 weight block
    B2 = k_pad + _OUT_LANES    # row of fused layer-2 bias
    W3 = B2 + 1                # row holding critic_out weight (lanes [A:A+H))
    B3 = B2 + 2                # row holding critic_out bias (lane 0)

    x = x_ref[...]                                   # (TB, k_pad), col S == 1.0
    w1 = w_ref[0:k_pad, :]                           # (k_pad, 128) layer-1 (bias folded)
    w2 = w_ref[L2:L2 + _OUT_LANES, :]                # (128, 128)   layer-2 block-diag
    b2 = w_ref[B2:B2 + 1, :]                         # (1, 128)
    w3 = w_ref[W3:W3 + 1, :]                         # (1, 128)     zero outside [A:A+H)
    b3 = w_ref[B3:B3 + 1, 0:1]                       # (1, 1)

    # ---- layer 1: actor_fc + critic_fc1 fused; bias folded into the matmul ----
    # h lanes: [0:H) = actor_h, [H:2H) = critic_h1, rest = 0
    h = jnp.tanh(jnp.dot(x, w1, preferred_element_type=jnp.float32))

    # ---- layer 2: actor_out + critic_fc2 fused (block-diagonal weight) ----
    # z lanes: [0:A) = actor logits, [A:A+H) = critic_fc2 pre-activation, rest = 0
    z = jnp.dot(h, w2, preferred_element_type=jnp.float32) + b2

    # ---- critic head: full-width tanh, masked cross-lane reduce (no MXU) ----
    value = jnp.sum(jnp.tanh(z) * w3, axis=1, keepdims=True) + b3      # (TB, 1)

    # ---- softmax over action lanes [0:A), computed full-width under a mask ----
    TB, L = out_ref.shape
    lane = jax.lax.broadcasted_iota(jnp.int32, (TB, L), 1)
    zl = jnp.where(lane < A, z, jnp.float32(-1e30))
    m = jnp.max(zl, axis=1, keepdims=True)
    e = jnp.exp(zl - m)                              # underflows to 0 outside mask
    inv = pl.reciprocal(jnp.sum(e, axis=1, keepdims=True), approx=False)
    policy_full = e * inv                            # (TB, 128), zero outside [0:A)

    # ---- single unmasked full-width store: [policy | value | 0...] ----
    out_ref[...] = jnp.where(lane == A, value, policy_full)


def pack_params(p, state_size, action_size, hidden=_HIDDEN):
    """Pack the 10 A2C parameters into one lane-dense f32 slab."""
    S, H, A = state_size, hidden, action_size
    assert 2 * H <= _OUT_LANES and A + H <= _OUT_LANES
    k_pad = _k_pad(S)
    rows = k_pad + _OUT_LANES + 8                    # layer-1 | layer-2 | tail (padded)

    w = jnp.zeros((rows, _OUT_LANES), jnp.float32)
    # layer-1 fused weight; bias folded into row S (multiplied by x's constant-1 col)
    w = w.at[0:S, 0:H].set(p["actor_fc_w"])
    w = w.at[0:S, H:2 * H].set(p["critic_fc1_w"])
    w = w.at[S, 0:H].set(p["actor_fc_b"][0])
    w = w.at[S, H:2 * H].set(p["critic_fc1_b"][0])
    # layer-2 fused weight; output columns chosen so logits land at lanes [0:A)
    # and critic_fc2 pre-activation at lanes [A:A+H)  (output-slab aligned)
    L2 = k_pad
    w = w.at[L2 + 0:L2 + H, 0:A].set(p["actor_out_w"])
    w = w.at[L2 + H:L2 + 2 * H, A:A + H].set(p["critic_fc2_w"])
    # tail rows: fused layer-2 bias, critic_out weight row, critic_out bias
    w = w.at[L2 + _OUT_LANES, 0:A].set(p["actor_out_b"][0])
    w = w.at[L2 + _OUT_LANES, A:A + H].set(p["critic_fc2_b"][0])
    w = w.at[L2 + _OUT_LANES + 1, A:A + H].set(p["critic_out_w"][:, 0])
    w = w.at[L2 + _OUT_LANES + 2, 0].set(p["critic_out_b"][0, 0])
    return w


def a2c_forward(x, w_slab, action_size, *, state_size, hidden=_HIDDEN):
    """x: (B, state_size) f32.  Returns (policy (B, A), value (B, 1))."""
    B, S = x.shape
    assert S == state_size
    k_pad = _k_pad(S)
    assert w_slab.shape == (k_pad + _OUT_LANES + 8, _OUT_LANES)

    # batch tile: whole (8-padded) batch when small, 2048-row tiles when large
    if B <= _MAX_TB:
        TB = ((B + 7) // 8) * 8
    else:
        TB = _MAX_TB
    Bp = ((B + TB - 1) // TB) * TB

    # pad x to (Bp, k_pad) with a constant-1 column at index S (folds layer-1 bias)
    xp = jnp.zeros((Bp, k_pad), jnp.float32)
    xp = xp.at[:B, :S].set(x)
    xp = xp.at[:, S].set(1.0)

    kernel = functools.partial(a2c_kernel, k_pad=k_pad, hidden=hidden,
                               action_size=action_size)
    out = pl.pallas_call(
        kernel,
        out_shape=jax.ShapeDtypeStruct((Bp, _OUT_LANES), jnp.float32),
        grid=(Bp // TB,),
        in_specs=[
            pl.BlockSpec((TB, k_pad), lambda i: (i, 0)),          # x tile
            pl.BlockSpec(w_slab.shape, lambda i: (0, 0)),         # weights, un-tiled
        ],
        out_specs=pl.BlockSpec((TB, _OUT_LANES), lambda i: (i, 0)),
        compiler_params=pltpu.CompilerParams(
            dimension_semantics=("parallel",)),
    )(xp, w_slab)

    policy = out[:B, 0:action_size]
    value = out[:B, action_size:action_size + 1]
    return policy, value


def init_params(key, state_size, action_size, hidden=_HIDDEN):
    """Mimic nn.Linear default init (U(-1/sqrt(fan_in), 1/sqrt(fan_in))), with
    actor_out / critic_out weights overridden to U(-0.001, 0.001) as in the
    PyTorch __init__.  Weights stored as (in, out)."""
    ks = jax.random.split(key, 10)

    def lin(kw, kb, fan_in, fan_out, w_bound=None):
        bound = 1.0 / jnp.sqrt(fan_in)
        wb = bound if w_bound is None else w_bound
        w = jax.random.uniform(kw, (fan_in, fan_out), jnp.float32, -wb, wb)
        b = jax.random.uniform(kb, (1, fan_out), jnp.float32, -bound, bound)
        return w, b

    p = {}
    p["actor_fc_w"], p["actor_fc_b"] = lin(ks[0], ks[1], state_size, hidden)
    p["actor_out_w"], p["actor_out_b"] = lin(ks[2], ks[3], hidden, action_size,
                                             w_bound=0.001)
    p["critic_fc1_w"], p["critic_fc1_b"] = lin(ks[4], ks[5], state_size, hidden)
    p["critic_fc2_w"], p["critic_fc2_b"] = lin(ks[6], ks[7], hidden, hidden)
    p["critic_out_w"], p["critic_out_b"] = lin(ks[8], ks[9], hidden, 1,
                                               w_bound=0.001)
    return p


def a2c_reference(x, p):
    """Pure-JAX reference for correctness check."""
    ah = jnp.tanh(x @ p["actor_fc_w"] + p["actor_fc_b"])
    logits = ah @ p["actor_out_w"] + p["actor_out_b"]
    policy = jax.nn.softmax(logits, axis=1)
    ch = jnp.tanh(x @ p["critic_fc1_w"] + p["critic_fc1_b"])
    ch = jnp.tanh(ch @ p["critic_fc2_w"] + p["critic_fc2_b"])
    value = ch @ p["critic_out_w"] + p["critic_out_b"]
    return policy, value


if __name__ == "__main__":
    state_size = 4     # CartPole observation dim
    action_size = 2    # CartPole action dim
    batch = 8

    key = jax.random.PRNGKey(0)
    k_params, k_x = jax.random.split(key)
    params = init_params(k_params, state_size, action_size)
    x = jax.random.normal(k_x, (batch, state_size), dtype=jnp.float32)

    w_slab = pack_params(params, state_size, action_size)
    policy, value = jax.block_until_ready(
        a2c_forward(x, w_slab, action_size, state_size=state_size))

    ref_policy, ref_value = a2c_reference(x, params)
    assert policy.shape == (batch, action_size)
    assert value.shape == (batch, 1)
    assert jnp.allclose(policy, ref_policy, atol=1e-5, rtol=1e-5)
    assert jnp.allclose(value, ref_value, atol=1e-5, rtol=1e-5)
    assert jnp.allclose(jnp.sum(policy, axis=1), 1.0, atol=1e-5)

    print("KERNEL_OK")
</pallas_src>

<mosaic_0001>
module attributes {stable_mosaic.version = 11 : i64} {
  func.func @a2c_kernel(%arg0: i32, %arg1: memref<8x8xf32, #tpu.memory_space<vmem>>, %arg2: memref<144x128xf32, #tpu.memory_space<vmem>>, %arg3: memref<8x128xf32, #tpu.memory_space<vmem>>) attributes {dimension_semantics = [#tpu.dimension_semantics<parallel>], iteration_bounds = array<i64: 1>, scalar_prefetch = 0 : i64, scratch_operands = 0 : i64, tpu.core_type = #tpu.core_type<tc>, window_params = [{transform_indices = @transform_0, window_bounds = array<i64: 8, 8>}, {pipeline_mode = #tpu.pipeline_mode<synchronous>, transform_indices = @transform_1, window_bounds = array<i64: 144, 128>}, {transform_indices = @transform_2, window_bounds = array<i64: 8, 128>}]} {
    %c0 = arith.constant 0 : index
    %c0_0 = arith.constant 0 : index
    %0 = vector.load %arg1[%c0, %c0_0] : memref<8x8xf32, #tpu.memory_space<vmem>>, vector<8x8xf32>
    %c0_1 = arith.constant 0 : index
    %c0_2 = arith.constant 0 : index
    %1 = vector.load %arg2[%c0_1, %c0_2] : memref<144x128xf32, #tpu.memory_space<vmem>>, vector<8x128xf32>
    %c8 = arith.constant 8 : index
    %c0_3 = arith.constant 0 : index
    %2 = vector.load %arg2[%c8, %c0_3] : memref<144x128xf32, #tpu.memory_space<vmem>>, vector<128x128xf32>
    %c136 = arith.constant 136 : index
    %c0_4 = arith.constant 0 : index
    %3 = vector.load %arg2[%c136, %c0_4] : memref<144x128xf32, #tpu.memory_space<vmem>>, vector<1x128xf32>
    %c137 = arith.constant 137 : index
    %c0_5 = arith.constant 0 : index
    %4 = vector.load %arg2[%c137, %c0_5] : memref<144x128xf32, #tpu.memory_space<vmem>>, vector<1x128xf32>
    %c138 = arith.constant 138 : index
    %c0_6 = arith.constant 0 : index
    %5 = vector.load %arg2[%c138, %c0_6] : memref<144x128xf32, #tpu.memory_space<vmem>>, vector<1x1xf32>
    %cst = arith.constant dense<0.000000e+00> : vector<8x128xf32>
    %6 = tpu.matmul %0, %1, %cst {dimension_numbers = #tpu.dot_dimension_numbers<[1], [0], [0], [1], [0, 0, 1, 1], [], []>} : vector<8x8xf32>, vector<8x128xf32>, vector<8x128xf32> -> vector<8x128xf32>
    %7 = math.tanh %6 : vector<8x128xf32>
    %cst_7 = arith.constant dense<0.000000e+00> : vector<8x128xf32>
    %8 = tpu.matmul %7, %2, %cst_7 {dimension_numbers = #tpu.dot_dimension_numbers<[1], [0], [0], [1], [0, 0, 1, 1], [], []>} : vector<8x128xf32>, vector<128x128xf32>, vector<8x128xf32> -> vector<8x128xf32>
    %9 = vector.broadcast %3 : vector<1x128xf32> to vector<8x128xf32>
    %10 = arith.addf %8, %9 : vector<8x128xf32>
    %11 = math.tanh %10 : vector<8x128xf32>
    %12 = vector.broadcast %4 : vector<1x128xf32> to vector<8x128xf32>
    %13 = arith.mulf %11, %12 : vector<8x128xf32>
    %cst_8 = arith.constant dense<0.000000e+00> : vector<8xf32>
    %14 = vector.multi_reduction <add>, %13, %cst_8 [1] : vector<8x128xf32> to vector<8xf32>
    %15 = vector.shape_cast %14 : vector<8xf32> to vector<8x1xf32>
    %16 = vector.broadcast %5 : vector<1x1xf32> to vector<8x1xf32>
    %17 = arith.addf %15, %16 : vector<8x1xf32>
    %18 = tpu.iota {dimensions = array<i32: 1>} : vector<8x128xi32>
    %c2_i32 = arith.constant 2 : i32
    %19 = vector.broadcast %c2_i32 : i32 to vector<8x128xi32>
    %20 = arith.cmpi slt, %18, %19 : vector<8x128xi32>
    %cst_9 = arith.constant -1.000000e+30 : f32
    %21 = vector.broadcast %cst_9 : f32 to vector<8x128xf32>
    %22 = arith.select %20, %10, %21 : vector<8x128xi1>, vector<8x128xf32>
    %cst_10 = arith.constant dense<0xFF800000> : vector<8xf32>
    %23 = vector.multi_reduction <maximumf>, %22, %cst_10 [1] : vector<8x128xf32> to vector<8xf32>
    %24 = vector.shape_cast %23 : vector<8xf32> to vector<8x1xf32>
    %25 = vector.broadcast %24 : vector<8x1xf32> to vector<8x128xf32>
    %26 = arith.subf %22, %25 : vector<8x128xf32>
    %27 = math.exp %26 : vector<8x128xf32>
    %cst_11 = arith.constant dense<0.000000e+00> : vector<8xf32>
    %28 = vector.multi_reduction <add>, %27, %cst_11 [1] : vector<8x128xf32> to vector<8xf32>
    %29 = vector.shape_cast %28 : vector<8xf32> to vector<8x1xf32>
    %30 = tpu.reciprocal %29 : vector<8x1xf32> -> vector<8x1xf32>
    %31 = vector.broadcast %30 : vector<8x1xf32> to vector<8x128xf32>
    %32 = arith.mulf %27, %31 : vector<8x128xf32>
    %c2_i32_12 = arith.constant 2 : i32
    %33 = vector.broadcast %c2_i32_12 : i32 to vector<8x128xi32>
    %34 = arith.cmpi eq, %18, %33 : vector<8x128xi32>
    %35 = vector.shape_cast %17 : vector<8x1xf32> to vector<8x1xf32>
    %36 = vector.broadcast %35 : vector<8x1xf32> to vector<8x128xf32>
    %37 = arith.select %34, %36, %32 : vector<8x128xi1>, vector<8x128xf32>
    %c0_13 = arith.constant 0 : index
    %c0_14 = arith.constant 0 : index
    %38 = vector.load %arg3[%c0_13, %c0_14] : memref<8x128xf32, #tpu.memory_space<vmem>>, vector<8x128xf32>
    tpu.vector_store %arg3[%c0_13, %c0_14], %37 {strides = array<i32>} : memref<8x128xf32, #tpu.memory_space<vmem>>, vector<8x128xf32>,
    return
  }
  func.func @transform_0(%arg0: i32) -> (i32, i32) {
    %c0_i32 = arith.constant 0 : i32
    %c0_i32_0 = arith.constant 0 : i32
    return %arg0, %c0_i32 : i32, i32
  }
  func.func @transform_1(%arg0: i32) -> (i32, i32) {
    %c0_i32 = arith.constant 0 : i32
    %c0_i32_0 = arith.constant 0 : i32
    %c0_i32_1 = arith.constant 0 : i32
    return %c0_i32, %c0_i32_0 : i32, i32
  }
  func.func @transform_2(%arg0: i32) -> (i32, i32) {
    %c0_i32 = arith.constant 0 : i32
    %c0_i32_0 = arith.constant 0 : i32
    return %arg0, %c0_i32 : i32, i32
  }
}

</mosaic_0001>

<bundles_post_ra>
// kernel: tpu_custom_call.1
= control target key start
LH: loop header
LB: loop body
LE: loop exit
PB: predicated region body
PF: predicated region fallthrough
CT: control target
= control target key end

     0   :  { %7 = vsyncpa [#allocation3], 0  ;;  %s437_s0 = inlined_call_operand.hbm [shape: f32[8,8], index: 0, kind: input, shape index: {}]   ;;  %s438_s1 = inlined_call_operand.hbm [shape: f32[144,128], index: 1, kind: input, shape index: {}]   ;;  %s439_s2 = inlined_call_operand.hbm [shape: f32[8,128], index: 2, kind: output, shape index: {}]  }
   0x1   :  { %8 = vsyncpa [#allocation6], 0 }
   0x2   :  { %9 = vsyncpa [#allocation4], 0  ;;  %s405_s9 = smov [#allocation2]   ;;  %s406_s11 = smov [#allocation5]  }
   0x3   :  { %s16_s10 = sshll.u32 %s405_s9, 4  ;;  %s25_s12 = sshll.u32 %s406_s11, 4  ;;  %s17_s10 = int_to_ptr.vmem [resolvable:$true] %s16_s10  ;;  %s26_s12 = int_to_ptr.vmem [resolvable:$true] %s25_s12 }
   0x4   :  { %s347_s13 = scalar_lea.vmem %s17_s10, 128  ;;  %p352_p1 = scmp.lt.s32.totalorder %s17_s10, %s17_s10 }
   0x5   :  { %p348_p0 = scmp.ne.s32.totalorder %s17_s10, %s347_s13  ;;  %p353_p2 = scmp.lt.s32.totalorder %s347_s13, %s347_s13 }
   0x7   :  { %p354_p3 = por %p353_p2, %p352_p1 }
   0x9   :  { %p355_p4 = pnand %p354_p3, %p348_p0 }
   0xb   :  { %358 = shalt.err (!%p355_p4)
}
   0xc   :  { %19 = dma.hbm_to_vmem [thread:$0]  %s437_s0, 128, %s17_s10, [#allocation3]  }
   0xd   :  { %s367_s16 = scalar_lea.vmem %s26_s12, 2304  ;;  %p372_p6 = scmp.lt.s32.totalorder %s26_s12, %s26_s12 }
   0xe   :  { %p368_p5 = scmp.ne.s32.totalorder %s26_s12, %s367_s16  ;;  %p373_p7 = scmp.lt.s32.totalorder %s367_s16, %s367_s16 }
  0x10   :  { %p374_p8 = por %p373_p7, %p372_p6 }
  0x12   :  { %p375_p9 = pnand %p374_p8, %p368_p5 }
  0x14   :  { %378 = shalt.err (!%p375_p9)
}
  0x15   :  { %s407_s17 = smov 128   ;;  %s408_s18 = smov 8  }
  0x16   :  { %31 = dma.hbm_to_vmem [thread:$0]  %s438_s1, 2304, %s26_s12, [#allocation6], %s407_s17, %s407_s17, %s408_s18  }
  0x17   :  { %399 = dma.done.wait [#allocation3], 128  }
  0x18   :  { %400 = vsyncadd [#allocation3], 4294967168 }
  0x19   :  { %401 = dma.done.wait [#allocation6], 2304  }
  0x1a   :  { %402 = vsyncadd [#allocation6], 4294964992  ;;  %v409_v0 = vmov 0.0   ;;  %vm410_vm0 = vmmov 0   ;;  %vm59_vm1 = vcmask 64512   ;;  %v39_v1 = vld [vmem:[#allocation5] sm:$0xff]  ;;  %v221_v22 = vlaneseq }
  0x1b   :  { %281 = vmatprep.subr.mxu0 %v409_v0  ;;  %283 = vmatprep.mubr.msk.f32.mxu0 %vm410_vm0, %v409_v0  ;;  %v38_v2 = vld [vmem:[#allocation2] sm:$0xff]  ;;  %v55_v3 = vld [vmem:[#allocation5 + $0x80] sm:$0xff]  ;;  %v53_v5 = vld [vmem:[#allocation5 + $0x70] sm:$0xff]  ;;  %v411_v32 = vmov 0   ;;  %s412_s0 = smov [#allocation7]  }
  0x1c   :  { %286 = vmatprep.subr.mxu1 %v409_v0  ;;  %318 = vmatprep.mubr.msk.f32.mxu1 %vm410_vm0, %v409_v0  ;;  %v54_v4 = vld [vmem:[#allocation5 + $0x78] sm:$0xff]  ;;  %v52_v6 = vld [vmem:[#allocation5 + $0x68] sm:$0xff]  ;;  %v51_v7 = vld [vmem:[#allocation5 + $0x60] sm:$0xff]  ;;  %v222_v23 = vand.u32 127, %v221_v22  ;;  %s248_s1 = sshll.u32 %s412_s0, 4  ;;  %s249_s1 = int_to_ptr.vmem [resolvable:$true] %s248_s1 }
  0x1d   :  { %282 = vmatpush3.msra.mxu0 %v39_v1  ;;  %287 = vmatpush3.msra.mxu1 %v55_v3  ;;  %v50_v8 = vld [vmem:[#allocation5 + $0x58] sm:$0xff]  ;;  %v49_v9 = vld [vmem:[#allocation5 + $0x50] sm:$0xff]  ;;  %v48_v10 = vld [vmem:[#allocation5 + $0x48] sm:$0xff]  ;;  %s379_s21 = scalar_lea.vmem %s249_s1, 128  ;;  %p384_p11 = scmp.lt.s32.totalorder %s249_s1, %s249_s1 }
  0x1e   :  { %284 = vmatmul.mubr.msk.f32.vlgmr.msra.gmra.mxu0 %vm59_vm1, %v38_v2  ;;  %288 = vmatprep.subr.mxu1 %v409_v0  ;;  %v47_v11 = vld [vmem:[#allocation5 + $0x40] sm:$0xff]  ;;  %v46_v12 = vld [vmem:[#allocation5 + $0x38] sm:$0xff]  ;;  %v45_v13 = vld [vmem:[#allocation5 + $0x30] sm:$0xff]  ;;  %vm223_vm2 = vcmp.lt.s32.totalorder %v222_v23, 2  ;;  %vm234_vm3 = vcmp.eq.s32.totalorder %v222_v23, 2  ;;  %p380_p10 = scmp.ne.s32.totalorder %s249_s1, %s379_s21  ;;  %p385_p12 = scmp.lt.s32.totalorder %s379_s21, %s379_s21 }
  0x1f   :  { %289 = vmatpush3.msra.mxu1 %v54_v4  ;;  %v44_v14 = vld [vmem:[#allocation5 + $0x28] sm:$0xff]  ;;  %v43_v15 = vld [vmem:[#allocation5 + $0x20] sm:$0xff]  ;;  %v42_v16 = vld [vmem:[#allocation5 + $0x18] sm:$0xff]  ;;  %329 = vset.pattern.permute.xlu1 %v411_v32 }
  0x20   :  { %290 = vmatprep.subr.mxu1 %v409_v0  ;;  %v41_v17 = vld [vmem:[#allocation5 + $0x10] sm:$0xff]  ;;  %v40_v18 = vld [vmem:[#allocation5 + $0x8] sm:$0xff]  ;;  %330 = vset.pattern.permute.xlu0 %v411_v32  ;;  %p386_p13 = por %p385_p12, %p384_p11 }
  0x21   :  { %291 = vmatpush3.msra.mxu1 %v53_v5  ;;  %v259_v24 = vld [vmem:[#allocation5 + $0x88] ss:$0 sm:$0xff]  ;;  %v260_v29 = vld [vmem:[#allocation5 + $0x89] ss:$0 sm:$0xff]  ;;  %v261_v37 = vld [vmem:[#allocation5 + $0x8a] ss:$0 sm:$0xff] }
  0x22   :  { %292 = vmatprep.subr.mxu1 %v409_v0  ;;  %p387_p0 = pnand %p386_p13, %p380_p10 }
  0x23   :  { %293 = vmatpush3.msra.mxu1 %v52_v6 }
  0x24   :  { %294 = vmatprep.subr.mxu1 %v409_v0 }
  0x25   :  { %295 = vmatpush3.msra.mxu1 %v51_v7 }
  0x26   :  { %296 = vmatprep.subr.mxu1 %v409_v0 }
  0x27   :  { %297 = vmatpush3.msra.mxu1 %v50_v8 }
  0x28   :  { %298 = vmatprep.subr.mxu1 %v409_v0 }
  0x29   :  { %299 = vmatpush3.msra.mxu1 %v49_v9 }
  0x2a   :  { %300 = vmatprep.subr.mxu1 %v409_v0 }
  0x2b   :  { %301 = vmatpush3.msra.mxu1 %v48_v10 }
  0x2c   :  { %302 = vmatprep.subr.mxu1 %v409_v0 }
  0x2d   :  { %303 = vmatpush3.msra.mxu1 %v47_v11 }
  0x2e   :  { %304 = vmatprep.subr.mxu1 %v409_v0 }
  0x2f   :  { %305 = vmatpush3.msra.mxu1 %v46_v12 }
  0x30   :  { %306 = vmatprep.subr.mxu1 %v409_v0 }
  0x31   :  { %307 = vmatpush3.msra.mxu1 %v45_v13 }
  0x32   :  { %308 = vmatprep.subr.mxu1 %v409_v0 }
  0x33   :  { %309 = vmatpush3.msra.mxu1 %v44_v14 }
  0x34   :  { %310 = vmatprep.subr.mxu1 %v409_v0 }
  0x35   :  { %311 = vmatpush3.msra.mxu1 %v43_v15 }
  0x36   :  { %312 = vmatprep.subr.mxu1 %v409_v0 }
  0x37   :  { %313 = vmatpush3.msra.mxu1 %v42_v16 }
  0x38   :  { %314 = vmatprep.subr.mxu1 %v409_v0 }
  0x39   :  { %315 = vmatpush3.msra.mxu1 %v41_v17 }
  0x3a   :  { %316 = vmatprep.subr.mxu1 %v409_v0 }
  0x3b   :  { %317 = vmatpush3.msra.mxu1 %v40_v18 }
  0xde   :  { %v129_v19 = vpop.f32.mrf.mxu0 }
  0xdf   :  { %331 = vtanh.f32 %v129_v19 }
  0xe0   :  { %v285_v20 = vpop.f32.mrf.mxu0 }
  0xec   :  { %v332_v21 = vpop.eup %331 }
  0xed   :  { %319 = vmatmul.mubr.f32.vlgmr.msra.gmra.mxu1 %v332_v21 }
 0x1ad   :  { %v204_v25 = vpop.f32.mrf.mxu1 }
 0x1ae   :  { %v205_v26 = vadd.f32 %v259_v24, %v204_v25 }
 0x1af   :  { %v320_v27 = vpop.f32.mrf.mxu1 }
 0x1b0   :  { %333 = vtanh.f32 %v205_v26  ;;  %v224_v28 = vsel %vm223_vm2, %v205_v26, -1e+30 }
 0x1b1   :  { %225 = vmax.xlane.f32.xlu0 %v224_v28 }
 0x1bd   :  { %v334_v30 = vpop.eup %333 }
 0x1be   :  { %v213_v31 = vmul.f32 %v334_v30, %v260_v29 }
 0x1c0   :  { %214 = vadd.xlane.f32.xlu0 %v213_v31 }
 0x23a   :  { %v226_v33 = vpop.xlane.xlu0 %225 }
 0x23b   :  { %v227_v34 = vsub.f32 %v224_v28, %v226_v33 }
 0x23d   :  { %v228_v35 = vmul.f32 1.442695, %v227_v34 }
 0x23f   :  { %335 = vpow2.f32 %v228_v35 }
 0x249   :  { %v215_v38 = vpop.xlane.xlu0 %214 }
 0x24a   :  { %v220_v39 = vadd.f32 %v261_v37, %v215_v38 }
 0x24c   :  { %v336_v36 = vpop.eup %335 }
 0x24d   :  { %230 = vadd.xlane.f32.xlu1 %v336_v36 }
 0x25e   :  { %237 = vperm.xlu1 %329, %v220_v39  }
 0x2d6   :  { %v231_v40 = vpop.xlane.xlu1 %230 }
 0x2d7   :  { %337 = vrcp.f32 %v231_v40 }
 0x2da   :  { %v238_v43 = vpop.permute.xlu1 %237 }
 0x2e4   :  { %v338_v41 = vpop.eup %337 }
 0x2e5   :  { %v233_v42 = vmul.f32 %v338_v41, %v336_v36 }
 0x2e7   :  { %v240_v44 = vsel %vm234_vm3, %v238_v43, %v233_v42 }
 0x2e8   :  { %241 = vst [vmem:[#allocation7] sm:$0xff] %v240_v44 }
 0x2e9   :  { %390 = shalt.err (!%p387_p0)
}
 0x2ea   :  { %251 = dma.vmem_to_hbm [thread:$0]  %s249_s1, 128, %s439_s2, [#allocation4]  }
 0x2eb   :  { %403 = dma.done.wait [#allocation4], 128  }
 0x2ec   :  { %404 = vsyncadd [#allocation4], 4294967168 }
 0x2ed   :  { %255 = vsyncpa [#allocation3], 1 }
 0x2ee   :  { %256 = vsyncpa [#allocation6], 1 }
 0x2ef   :  { %257 = vsyncpa [#allocation4], 1 }

</bundles_post_ra>
